<compile_context>
chip_gen: v5e
topology: v5e:2x2
jax: 0.10.0
libtpu: 0.0.40
codegen_flags: <defaults>
</compile_context>

<pallas_src>
import functools

import jax
import jax.numpy as jnp
from jax import lax
from jax.experimental import pallas as pl
from jax.experimental.pallas import tpu as pltpu

LN_EPS = 1e-5  # nn.LayerNorm default


def _sln_kernel(h_ref, w_ref, sw_ref, sb_ref, o_ref, *, inv_f):
    """h/w: (TM, F) tiles; sw/sb: (1, F) f32 folded affine params."""
    h = h_ref[...].astype(jnp.float32)
    w = w_ref[...].astype(jnp.float32)

    # Single-pass biased mean / variance over the feature axis.
    s1 = jnp.sum(h, axis=-1, keepdims=True)
    s2 = jnp.sum(h * h, axis=-1, keepdims=True)
    mean = s1 * inv_f
    var = jnp.maximum(s2 * inv_f - mean * mean, 0.0)
    h_hat = (h - mean) * lax.rsqrt(var + LN_EPS)

    # gamma*w*(h_hat*ln_w + ln_b) + beta*w == w * (h_hat*sw + sb)
    o_ref[...] = (w * (h_hat * sw_ref[...] + sb_ref[...])).astype(o_ref.dtype)


@functools.partial(jax.jit, static_argnames=("tm",))
def sln_forward(h, w, ln_weight, ln_bias, gamma, beta, *, tm=None):
    """h, w: (B, S, F); ln_weight/ln_bias: (F,); gamma/beta: size-1 params."""
    B, S, F = h.shape
    rows = B * S

    # Row tile: target ~2 MiB of f32 per input tile, multiple of 8 sublanes,
    # capped at 1024 rows and at the (8-rounded) row count.
    if tm is None:
        tm = (2 * 1024 * 1024) // (F * 4)
        tm = min(tm, 1024)
    tm = max(8, (int(tm) // 8) * 8)
    rows_pad8 = ((rows + 7) // 8) * 8
    tm = min(tm, rows_pad8)

    h2 = h.reshape(rows, F)
    w2 = w.reshape(rows, F)

    # Fold the scalar self-modulation into the LayerNorm affine params (O(F)).
    g = jnp.asarray(gamma, jnp.float32).reshape(())
    b = jnp.asarray(beta, jnp.float32).reshape(())
    sw = (g * ln_weight.astype(jnp.float32)).reshape(1, F)
    sb = (g * ln_bias.astype(jnp.float32) + b).reshape(1, F)

    grid = (pl.cdiv(rows, tm),)

    # VMEM budget: double-buffered h/w/out streams + f32 temporaries + headroom.
    itm_in = jnp.dtype(h.dtype).itemsize
    tile_f32 = tm * F * 4
    io_bytes = 2 * 3 * tm * F * itm_in
    vmem_limit = int(io_bytes + 6 * tile_f32 + (4 << 20))
    vmem_limit = max(16 << 20, min(vmem_limit, 40 << 20))

    out = pl.pallas_call(
        functools.partial(_sln_kernel, inv_f=1.0 / F),
        out_shape=jax.ShapeDtypeStruct((rows, F), h.dtype),
        grid=grid,
        in_specs=[
            pl.BlockSpec((tm, F), lambda i: (i, 0)),   # h rows
            pl.BlockSpec((tm, F), lambda i: (i, 0)),   # w rows
            pl.BlockSpec((1, F), lambda i: (0, 0)),    # folded ln weight
            pl.BlockSpec((1, F), lambda i: (0, 0)),    # folded ln bias
        ],
        out_specs=pl.BlockSpec((tm, F), lambda i: (i, 0)),
        compiler_params=pltpu.CompilerParams(
            dimension_semantics=("parallel",),
            vmem_limit_bytes=vmem_limit,
        ),
    )(h2, w2, sw, sb)

    return out.reshape(B, S, F)


def sln_reference(h, w, ln_weight, ln_bias, gamma, beta):
    h32 = h.astype(jnp.float32)
    w32 = w.astype(jnp.float32)
    mean = jnp.mean(h32, axis=-1, keepdims=True)
    var = jnp.mean((h32 - mean) ** 2, axis=-1, keepdims=True)
    ln = (h32 - mean) / jnp.sqrt(var + LN_EPS) * ln_weight + ln_bias
    g = jnp.asarray(gamma, jnp.float32)
    b = jnp.asarray(beta, jnp.float32)
    return (g * w32 * ln + b * w32).astype(h.dtype)


if __name__ == "__main__":
    B, S, F = 2, 8, 32  # batch, sequence, number_of_features

    key = jax.random.PRNGKey(0)
    k_h, k_w, k_g, k_b = jax.random.split(key, 4)

    h = jax.random.normal(k_h, (B, S, F), dtype=jnp.float32)
    w = jax.random.normal(k_w, (B, S, F), dtype=jnp.float32)

    # Parameters matching the PyTorch module:
    gamma = jax.random.normal(k_g, (1, 1, 1))   # nn.Parameter(torch.randn(1,1,1))
    beta = jax.random.normal(k_b, (1, 1, 1))    # nn.Parameter(torch.randn(1,1,1))
    ln_weight = jnp.ones((F,), jnp.float32)     # nn.LayerNorm default weight
    ln_bias = jnp.zeros((F,), jnp.float32)      # nn.LayerNorm default bias

    out = sln_forward(h, w, ln_weight, ln_bias, gamma, beta)
    out = jax.block_until_ready(out)

    ref = sln_reference(h, w, ln_weight, ln_bias, gamma, beta)
    assert out.shape == (B, S, F)
    assert jnp.allclose(out, ref, atol=2e-5, rtol=2e-5), "mismatch vs reference"

    print("KERNEL_OK")
</pallas_src>

<mosaic_0001>
module attributes {stable_mosaic.version = 11 : i64} {
  func.func @_sln_kernel(%arg0: i32, %arg1: memref<16x32xf32, #tpu.memory_space<vmem>>, %arg2: memref<16x32xf32, #tpu.memory_space<vmem>>, %arg3: memref<1x32xf32, #tpu.memory_space<vmem>>, %arg4: memref<1x32xf32, #tpu.memory_space<vmem>>, %arg5: memref<16x32xf32, #tpu.memory_space<vmem>>) attributes {dimension_semantics = [#tpu.dimension_semantics<parallel>], iteration_bounds = array<i64: 1>, scalar_prefetch = 0 : i64, scratch_operands = 0 : i64, tpu.core_type = #tpu.core_type<tc>, window_params = [{transform_indices = @transform_0, window_bounds = array<i64: 16, 32>}, {transform_indices = @transform_1, window_bounds = array<i64: 16, 32>}, {pipeline_mode = #tpu.pipeline_mode<synchronous>, transform_indices = @transform_2, window_bounds = array<i64: 1, 32>}, {pipeline_mode = #tpu.pipeline_mode<synchronous>, transform_indices = @transform_3, window_bounds = array<i64: 1, 32>}, {transform_indices = @transform_4, window_bounds = array<i64: 16, 32>}]} {
    %c0 = arith.constant 0 : index
    %c0_0 = arith.constant 0 : index
    %0 = vector.load %arg1[%c0, %c0_0] : memref<16x32xf32, #tpu.memory_space<vmem>>, vector<16x32xf32>
    %c0_1 = arith.constant 0 : index
    %c0_2 = arith.constant 0 : index
    %1 = vector.load %arg2[%c0_1, %c0_2] : memref<16x32xf32, #tpu.memory_space<vmem>>, vector<16x32xf32>
    %cst = arith.constant dense<0.000000e+00> : vector<16xf32>
    %2 = vector.multi_reduction <add>, %0, %cst [1] : vector<16x32xf32> to vector<16xf32>
    %3 = vector.shape_cast %2 : vector<16xf32> to vector<16x1xf32>
    %4 = arith.mulf %0, %0 : vector<16x32xf32>
    %cst_3 = arith.constant dense<0.000000e+00> : vector<16xf32>
    %5 = vector.multi_reduction <add>, %4, %cst_3 [1] : vector<16x32xf32> to vector<16xf32>
    %6 = vector.shape_cast %5 : vector<16xf32> to vector<16x1xf32>
    %cst_4 = arith.constant 3.125000e-02 : f32
    %7 = vector.broadcast %cst_4 : f32 to vector<16x1xf32>
    %8 = arith.mulf %3, %7 : vector<16x1xf32>
    %cst_5 = arith.constant 3.125000e-02 : f32
    %9 = vector.broadcast %cst_5 : f32 to vector<16x1xf32>
    %10 = arith.mulf %6, %9 : vector<16x1xf32>
    %11 = arith.mulf %8, %8 : vector<16x1xf32>
    %12 = arith.subf %10, %11 : vector<16x1xf32>
    %cst_6 = arith.constant 0.000000e+00 : f32
    %13 = vector.broadcast %cst_6 : f32 to vector<16x1xf32>
    %14 = arith.maximumf %12, %13 : vector<16x1xf32>
    %15 = vector.broadcast %8 : vector<16x1xf32> to vector<16x32xf32>
    %16 = arith.subf %0, %15 : vector<16x32xf32>
    %cst_7 = arith.constant 9.99999974E-6 : f32
    %17 = vector.broadcast %cst_7 : f32 to vector<16x1xf32>
    %18 = arith.addf %14, %17 : vector<16x1xf32>
    %19 = math.rsqrt %18 : vector<16x1xf32>
    %20 = vector.broadcast %19 : vector<16x1xf32> to vector<16x32xf32>
    %21 = arith.mulf %16, %20 : vector<16x32xf32>
    %c0_8 = arith.constant 0 : index
    %c0_9 = arith.constant 0 : index
    %22 = vector.load %arg3[%c0_8, %c0_9] : memref<1x32xf32, #tpu.memory_space<vmem>>, vector<1x32xf32>
    %23 = vector.broadcast %22 : vector<1x32xf32> to vector<16x32xf32>
    %24 = arith.mulf %21, %23 : vector<16x32xf32>
    %c0_10 = arith.constant 0 : index
    %c0_11 = arith.constant 0 : index
    %25 = vector.load %arg4[%c0_10, %c0_11] : memref<1x32xf32, #tpu.memory_space<vmem>>, vector<1x32xf32>
    %26 = vector.broadcast %25 : vector<1x32xf32> to vector<16x32xf32>
    %27 = arith.addf %24, %26 : vector<16x32xf32>
    %28 = arith.mulf %1, %27 : vector<16x32xf32>
    %c0_12 = arith.constant 0 : index
    %c0_13 = arith.constant 0 : index
    %29 = vector.load %arg5[%c0_12, %c0_13] : memref<16x32xf32, #tpu.memory_space<vmem>>, vector<16x32xf32>
    tpu.vector_store %arg5[%c0_12, %c0_13], %28 {strides = array<i32>} : memref<16x32xf32, #tpu.memory_space<vmem>>, vector<16x32xf32>,
    return
  }
  func.func @transform_0(%arg0: i32) -> (i32, i32) {
    %c0_i32 = arith.constant 0 : i32
    %c0_i32_0 = arith.constant 0 : i32
    return %arg0, %c0_i32 : i32, i32
  }
  func.func @transform_1(%arg0: i32) -> (i32, i32) {
    %c0_i32 = arith.constant 0 : i32
    %c0_i32_0 = arith.constant 0 : i32
    return %arg0, %c0_i32 : i32, i32
  }
  func.func @transform_2(%arg0: i32) -> (i32, i32) {
    %c0_i32 = arith.constant 0 : i32
    %c0_i32_0 = arith.constant 0 : i32
    %c0_i32_1 = arith.constant 0 : i32
    return %c0_i32, %c0_i32_0 : i32, i32
  }
  func.func @transform_3(%arg0: i32) -> (i32, i32) {
    %c0_i32 = arith.constant 0 : i32
    %c0_i32_0 = arith.constant 0 : i32
    %c0_i32_1 = arith.constant 0 : i32
    return %c0_i32, %c0_i32_0 : i32, i32
  }
  func.func @transform_4(%arg0: i32) -> (i32, i32) {
    %c0_i32 = arith.constant 0 : i32
    %c0_i32_0 = arith.constant 0 : i32
    return %arg0, %c0_i32 : i32, i32
  }
}

</mosaic_0001>

<bundles_post_ra>
// kernel: sln_forward.1
= control target key start
LH: loop header
LB: loop body
LE: loop exit
PB: predicated region body
PF: predicated region fallthrough
CT: control target
= control target key end

     0   :  { %9 = vsyncpa [#allocation3], 0  ;;  %s290_s0 = inlined_call_operand.hbm [shape: f32[16,32], index: 0, kind: input, shape index: {}]   ;;  %s291_s1 = inlined_call_operand.hbm [shape: f32[16,32], index: 1, kind: input, shape index: {}]   ;;  %s292_s2 = inlined_call_operand.vmem [shape: f32[1,32], index: 2, kind: input, shape index: {}]   ;;  %s293_s3 = inlined_call_operand.vmem [shape: f32[1,32], index: 3, kind: input, shape index: {}]   ;;  %s294_s4 = inlined_call_operand.hbm [shape: f32[16,32], index: 4, kind: output, shape index: {}]  }
   0x1   :  { %10 = vsyncpa [#allocation6], 0 }
   0x2   :  { %11 = vsyncpa [#allocation4], 0  ;;  %s16_s17 = sshll.u32 %s290_s0, 4  ;;  %s230_s18 = smov [#allocation2]   ;;  %s17_s17 = int_to_ptr.hbm [resolvable:$true] %s16_s17 }
   0x3   :  { %s18_s19 = sshll.u32 %s230_s18, 4  ;;  %s29_s22 = sshll.u32 %s291_s1, 4  ;;  %s19_s19 = int_to_ptr.vmem [resolvable:$true] %s18_s19  ;;  %s30_s22 = int_to_ptr.hbm [resolvable:$true] %s29_s22 }
   0x4   :  { %s231_s23 = smov 128   ;;  %s232_s24 = smov 8  }
   0x5   :  { %24 = dma.hbm_to_vmem [thread:$0]  %s17_s17, 256, %s19_s19, [#allocation3], %s231_s23, %s231_s23, %s232_s24  }
   0x6   :  { %s233_s25 = smov [#allocation5]  }
   0x7   :  { %s31_s26 = sshll.u32 %s233_s25, 4  ;;  %s32_s26 = int_to_ptr.vmem [resolvable:$true] %s31_s26 }
   0x8   :  { %37 = dma.hbm_to_vmem [thread:$0]  %s30_s22, 256, %s32_s26, [#allocation6], %s231_s23, %s231_s23, %s232_s24  }
   0x9   :  { %224 = dma.done.wait [#allocation3], 256  }
   0xa   :  { %225 = vsyncadd [#allocation3], 4294967040 }
   0xb   :  { %226 = dma.done.wait [#allocation6], 256  }
   0xc   :  { %227 = vsyncadd [#allocation6], 4294967040  ;;  %vm54_vm0 = vcmask 261120   ;;  %v50_v0 = vld [vmem:[#allocation2] sm:$0xff]  ;;  %v51_v3 = vld [vmem:[#allocation2 + $0x8] sm:$0xff]  ;;  %s127_s5 = sshll.u32 %s294_s4, 4  ;;  %s128_s5 = int_to_ptr.hbm [resolvable:$true] %s127_s5 }
   0xd   :  { %v55_v1 = vsel %vm54_vm0, %v50_v0, 0.0  ;;  %v61_v2 = vmul.f32 %v50_v0, %v50_v0  ;;  %v62_v5 = vmul.f32 %v51_v3, %v51_v3  ;;  %v58_v6 = vsel %vm54_vm0, %v51_v3, 0.0  ;;  %v146_v32 = vld [vmem:[%s292_s2] ss:$0 sm:$0xff]  ;;  %v52_v40 = vld [vmem:[#allocation5] sm:$0xff]  ;;  %v53_v49 = vld [vmem:[#allocation5 + $0x8] sm:$0xff] }
   0xe   :  { %56 = vadd.xlane.f32.xlu0 %v55_v1  ;;  %v147_v37 = vld [vmem:[%s293_s3] ss:$0 sm:$0xff]  ;;  %s234_s2 = smov [#allocation7]  }
   0xf   :  { %v63_v4 = vsel %vm54_vm0, %v61_v2, 0.0  ;;  %v66_v7 = vsel %vm54_vm0, %v62_v5, 0.0  ;;  %s125_s29 = sshll.u32 %s234_s2, 4  ;;  %s126_s29 = int_to_ptr.vmem [resolvable:$true] %s125_s29 }
  0x10   :  { %64 = vadd.xlane.f32.xlu1 %v63_v4 }
  0x16   :  { %59 = vadd.xlane.f32.xlu0 %v58_v6 }
  0x18   :  { %67 = vadd.xlane.f32.xlu1 %v66_v7 }
  0x81   :  { %v57_v8 = vpop.xlane.xlu0 %56 }
  0x82   :  { %v69_v9 = vmul.f32 0.03125, %v57_v8 }
  0x83   :  { %v65_v10 = vpop.xlane.xlu1 %64 }
  0x84   :  { %v73_v11 = vmul.f32 %v69_v9, %v69_v9  ;;  %v71_v12 = vmul.f32 0.03125, %v65_v10  ;;  %v79_v31 = vsub.f32 %v50_v0, %v69_v9 }
  0x86   :  { %v75_v13 = vsub.f32 %v71_v12, %v73_v11 }
  0x88   :  { %v77_v14 = vmax.f32 %v75_v13, 0.0 }
  0x89   :  { %v60_v15 = vpop.xlane.xlu0 %59 }
  0x8a   :  { %v81_v16 = vadd.f32 1e-05, %v77_v14  ;;  %v70_v17 = vmul.f32 0.03125, %v60_v15 }
  0x8b   :  { %v68_v18 = vpop.xlane.xlu1 %67 }
  0x8c   :  { %148 = vrsqrt.f32 %v81_v16  ;;  %v74_v19 = vmul.f32 %v70_v17, %v70_v17  ;;  %v72_v20 = vmul.f32 0.03125, %v68_v18  ;;  %vm89_vm2 = vweird.f32 %v81_v16 }
  0x8d   :  { %v80_v45 = vsub.f32 %v51_v3, %v70_v17 }
  0x8e   :  { %v76_v21 = vsub.f32 %v72_v20, %v74_v19 }
  0x90   :  { %v78_v22 = vmax.f32 %v76_v21, 0.0 }
  0x92   :  { %v149_v23 = vpop.eup %148  ;;  %v82_v25 = vadd.f32 1e-05, %v78_v22 }
  0x93   :  { %v84_v24 = vmul.f32 %v149_v23, %v81_v16  ;;  %vm90_vm1 = vweird.f32 %v149_v23 }
  0x94   :  { %150 = vrsqrt.f32 %v82_v25  ;;  %vm91_vm3 = vmor %vm89_vm2, %vm90_vm1  ;;  %vm99_vm5 = vweird.f32 %v82_v25 }
  0x95   :  { %v85_v26 = vmul.f32 %v149_v23, %v84_v24 }
  0x97   :  { %v86_v27 = vmul.f32 0.5, %v85_v26 }
  0x99   :  { %v87_v28 = vsub.f32 1.5, %v86_v27 }
  0x9a   :  { %v151_v29 = vpop.eup %150 }
  0x9b   :  { %v88_v30 = vmul.f32 %v149_v23, %v87_v28  ;;  %v94_v33 = vmul.f32 %v151_v29, %v82_v25  ;;  %vm100_vm4 = vweird.f32 %v151_v29 }
  0x9c   :  { %vm101_vm6 = vmor %vm99_vm5, %vm100_vm4 }
  0x9d   :  { %v92_v34 = vsel %vm91_vm3, %v149_v23, %v88_v30  ;;  %v95_v36 = vmul.f32 %v151_v29, %v94_v33 }
  0x9e   :  { %v103_v35 = vmul.f32 %v92_v34, %v79_v31 }
  0x9f   :  { %v96_v38 = vmul.f32 0.5, %v95_v36 }
  0xa0   :  { %v109_v39 = vmul.f32 %v146_v32, %v103_v35 }
  0xa1   :  { %v97_v41 = vsub.f32 1.5, %v96_v38 }
  0xa2   :  { %v115_v42 = vadd.f32 %v147_v37, %v109_v39 }
  0xa3   :  { %v98_v43 = vmul.f32 %v151_v29, %v97_v41 }
  0xa4   :  { %v117_v44 = vmul.f32 %v115_v42, %v52_v40 }
  0xa5   :  { %v102_v46 = vsel %vm101_vm6, %v151_v29, %v98_v43 }
  0xa6   :  { %119 = vst.msk [vmem:[#allocation7] sm:$0xff] %vm54_vm0, %v117_v44  ;;  %v104_v47 = vmul.f32 %v102_v46, %v80_v45 }
  0xa8   :  { %v110_v48 = vmul.f32 %v146_v32, %v104_v47 }
  0xaa   :  { %v116_v50 = vadd.f32 %v147_v37, %v110_v48 }
  0xac   :  { %v118_v51 = vmul.f32 %v116_v50, %v53_v49 }
  0xae   :  { %120 = vst.msk [vmem:[#allocation7 + $0x8] sm:$0xff] %vm54_vm0, %v118_v51 }
  0xaf   :  { %133 = dma.vmem_to_hbm [thread:$0]  %s126_s29, 256, %s128_s5, [#allocation4], %s231_s23, %s231_s23, %s232_s24  }
  0xb0   :  { %228 = dma.done.wait [#allocation4], 256  }
  0xb1   :  { %229 = vsyncadd [#allocation4], 4294967040 }
  0xb2   :  { %138 = vsyncpa [#allocation3], 1 }
  0xb3   :  { %139 = vsyncpa [#allocation6], 1 }
  0xb4   :  { %140 = vsyncpa [#allocation4], 1 }

</bundles_post_ra>
